<compile_context>
chip_gen: v7x
topology: tpu7x:2x2x1
jax: 0.10.0
libtpu: 0.0.40
codegen_flags: <defaults>
</compile_context>

<pallas_src>
import jax
import jax.numpy as jnp
from jax.experimental import pallas as pl
from jax.experimental.pallas import tpu as pltpu

PADF = 128          # hidden feature dims padded to one 128-lane tile
N_LAYERS = 5


def _round_up(n, m):
    return -(-n // m) * m


def _gelu_exact(v):
    # PyTorch F.gelu default ("none") is the exact erf-based GELU.
    return v * 0.5 * (1.0 + jax.lax.erf(v * jnp.float32(0.7071067811865476)))


def _make_kernel(in_size, out_size):
    """Builds the fused-MLP kernel with static input/output widths baked in."""

    def kernel(x_ref, w_ref, b_ref, o_ref):
        # x_ref: [TB, in_size]; w_ref: [5, PADF, PADF]; b_ref: [5, 1, PADF];
        # o_ref: [TB, out_size].
        h = x_ref[...]
        # Layer 0: contract over the native input width (static ref slice of
        # the packed weight slab; K=16 fits one MXU pass just like K=128).
        h = _gelu_exact(
            jnp.dot(h, w_ref[0, :in_size, :], preferred_element_type=jnp.float32)
            + b_ref[0])
        # Layers 1..3: 128x128 padded (padded lanes are exactly zero and stay
        # zero through GELU since padded weight cols / bias lanes are zero).
        for layer in range(1, N_LAYERS - 1):
            h = _gelu_exact(
                jnp.dot(h, w_ref[layer], preferred_element_type=jnp.float32)
                + b_ref[layer])
        # Output layer: compute full 128 lanes on the MXU, but only tanh and
        # store the real out_size lanes (narrow HBM writeback).
        y = (jnp.dot(h, w_ref[N_LAYERS - 1], preferred_element_type=jnp.float32)
             + b_ref[N_LAYERS - 1])
        o_ref[...] = jnp.tanh(y[:, :out_size]).astype(o_ref.dtype)

    return kernel


def pack_params(params):
    """Pack 5 (W [in,out], b [1,out]) pairs into lane-dense padded tensors.

    Returns (W_packed [5, PADF, PADF], B_packed [5, 1, PADF]), zero-filled so
    padded lanes stay exactly zero through GELU/tanh.
    """
    W = jnp.zeros((N_LAYERS, PADF, PADF), jnp.float32)
    B = jnp.zeros((N_LAYERS, 1, PADF), jnp.float32)
    for l, (w, b) in enumerate(params):
        assert w.shape[0] <= PADF and w.shape[1] <= PADF
        W = W.at[l, : w.shape[0], : w.shape[1]].set(w.astype(jnp.float32))
        B = B.at[l, :, : b.shape[1]].set(b.astype(jnp.float32))
    return W, B


def _choose_tb(batch, tb_max):
    """Pick the batch tile: big (<= tb_max rows), multiple of 8, and >= 2 grid
    steps for mid/large batches so both v7x TensorCores get work."""
    rows = _round_up(batch, 8)
    if rows <= 8:
        return 8
    tb = min(tb_max, _round_up(-(-rows // 2), 8))
    return max(tb, 8)


def mpc_policy_net_forward(x, packed_params, out_size, *, tb_max=512):
    """x: [B, input_size] f32; packed_params: output of pack_params."""
    W, B = packed_params
    batch, in_size = x.shape

    TB = _choose_tb(batch, tb_max)
    padded_batch = _round_up(batch, TB)

    xf = x.astype(jnp.float32)
    if padded_batch != batch:
        # Only pad batch rows (no lane padding); padded rows are discarded below.
        xf = jnp.pad(xf, ((0, padded_batch - batch), (0, 0)))

    grid = (padded_batch // TB,)
    out = pl.pallas_call(
        _make_kernel(in_size, out_size),
        out_shape=jax.ShapeDtypeStruct((padded_batch, out_size), jnp.float32),
        grid=grid,
        in_specs=[
            pl.BlockSpec((TB, in_size), lambda i: (i, 0)),               # x: tiled over batch
            pl.BlockSpec((N_LAYERS, PADF, PADF), lambda i: (0, 0, 0)),   # weights: resident
            pl.BlockSpec((N_LAYERS, 1, PADF), lambda i: (0, 0, 0)),      # biases: resident
        ],
        out_specs=pl.BlockSpec((TB, out_size), lambda i: (i, 0)),        # narrow output
        compiler_params=pltpu.CompilerParams(
            dimension_semantics=("parallel",)),   # 2x TC sharding on v7x, neutral on v5e/v6e
    )(xf, W, B)

    if padded_batch != batch:
        out = out[:batch]
    return out


def init_params(key, input_size, output_size):
    dims = [input_size, 64, 128, 64, 32, output_size]
    params = []
    for i in range(N_LAYERS):
        key, kw, kb = jax.random.split(key, 3)
        fan_in = dims[i]
        bound = 1.0 / jnp.sqrt(fan_in)
        # PyTorch nn.Linear default init: U(-1/sqrt(fan_in), 1/sqrt(fan_in)).
        w = jax.random.uniform(kw, (dims[i], dims[i + 1]), jnp.float32, -bound, bound)
        b = jax.random.uniform(kb, (1, dims[i + 1]), jnp.float32, -bound, bound)
        params.append((w, b))
    return params


def reference_forward(x, params):
    h = x
    for i, (w, b) in enumerate(params):
        h = h @ w + b
        if i < N_LAYERS - 1:
            h = jax.nn.gelu(h, approximate=False)
        else:
            h = jnp.tanh(h)
    return h


if __name__ == "__main__":
    key = jax.random.PRNGKey(0)
    input_size = 16
    output_size = 8

    k_params, k_x1, k_x2 = jax.random.split(key, 3)
    params = init_params(k_params, input_size, output_size)
    packed = pack_params(params)   # pack/pad once; reuse across MPC steps

    # Small MPC-style batch (single grid step).
    x_small = jax.random.normal(k_x1, (2, input_size), jnp.float32)
    out_small = jax.block_until_ready(
        mpc_policy_net_forward(x_small, packed, output_size))
    ref_small = reference_forward(x_small, params)
    assert out_small.shape == (2, output_size)
    assert jnp.allclose(out_small, ref_small, atol=1e-5, rtol=1e-5), "mismatch (batch=2)"

    # Larger, non-multiple-of-8 batch: exercises row padding + a 2-step grid
    # (both v7x TensorCores) + the narrow output store.
    x_big = jax.random.normal(k_x2, (300, input_size), jnp.float32)
    out_big = jax.block_until_ready(
        mpc_policy_net_forward(x_big, packed, output_size))
    ref_big = reference_forward(x_big, params)
    assert out_big.shape == (300, output_size)
    assert jnp.allclose(out_big, ref_big, atol=1e-5, rtol=1e-5), "mismatch (batch=300)"

    print("KERNEL_OK")
</pallas_src>

<mosaic_0001>
module attributes {stable_mosaic.version = 11 : i64} {
  func.func @kernel(%arg0: i32, %arg1: memref<8x16xf32, #tpu.memory_space<vmem>>, %arg2: memref<5x128x128xf32, #tpu.memory_space<vmem>>, %arg3: memref<5x1x128xf32, #tpu.memory_space<vmem>>, %arg4: memref<8x8xf32, #tpu.memory_space<vmem>>) attributes {dimension_semantics = [#tpu.dimension_semantics<parallel>], iteration_bounds = array<i64: 1>, scalar_prefetch = 0 : i64, scratch_operands = 0 : i64, tpu.core_type = #tpu.core_type<tc>, window_params = [{transform_indices = @transform_0, window_bounds = array<i64: 8, 16>}, {pipeline_mode = #tpu.pipeline_mode<synchronous>, transform_indices = @transform_1, window_bounds = array<i64: 5, 128, 128>}, {pipeline_mode = #tpu.pipeline_mode<synchronous>, transform_indices = @transform_2, window_bounds = array<i64: 5, 1, 128>}, {transform_indices = @transform_3, window_bounds = array<i64: 8, 8>}]} {
    %c0 = arith.constant 0 : index
    %c0_0 = arith.constant 0 : index
    %0 = vector.load %arg1[%c0, %c0_0] : memref<8x16xf32, #tpu.memory_space<vmem>>, vector<8x16xf32>
    %c0_1 = arith.constant 0 : index
    %c0_2 = arith.constant 0 : index
    %c0_3 = arith.constant 0 : index
    %1 = vector.load %arg2[%c0_1, %c0_2, %c0_3] : memref<5x128x128xf32, #tpu.memory_space<vmem>>, vector<1x16x128xf32>
    %2 = vector.shape_cast %1 : vector<1x16x128xf32> to vector<16x128xf32>
    %cst = arith.constant dense<0.000000e+00> : vector<8x128xf32>
    %3 = tpu.matmul %0, %2, %cst {dimension_numbers = #tpu.dot_dimension_numbers<[1], [0], [0], [1], [0, 0, 1, 1], [], []>} : vector<8x16xf32>, vector<16x128xf32>, vector<8x128xf32> -> vector<8x128xf32>
    %c0_4 = arith.constant 0 : index
    %c0_5 = arith.constant 0 : index
    %c0_6 = arith.constant 0 : index
    %4 = vector.load %arg3[%c0_4, %c0_5, %c0_6] : memref<5x1x128xf32, #tpu.memory_space<vmem>>, vector<1x1x128xf32>
    %5 = vector.shape_cast %4 : vector<1x1x128xf32> to vector<1x128xf32>
    %6 = vector.broadcast %5 : vector<1x128xf32> to vector<8x128xf32>
    %7 = arith.addf %3, %6 : vector<8x128xf32>
    %cst_7 = arith.constant 5.000000e-01 : f32
    %8 = vector.broadcast %cst_7 : f32 to vector<8x128xf32>
    %9 = arith.mulf %7, %8 : vector<8x128xf32>
    %cst_8 = arith.constant 0.707106769 : f32
    %10 = vector.broadcast %cst_8 : f32 to vector<8x128xf32>
    %11 = arith.mulf %7, %10 : vector<8x128xf32>
    %12 = math.erf %11 : vector<8x128xf32>
    %cst_9 = arith.constant 1.000000e+00 : f32
    %13 = vector.broadcast %cst_9 : f32 to vector<8x128xf32>
    %14 = arith.addf %13, %12 : vector<8x128xf32>
    %15 = arith.mulf %9, %14 : vector<8x128xf32>
    %c1 = arith.constant 1 : index
    %c0_10 = arith.constant 0 : index
    %c0_11 = arith.constant 0 : index
    %16 = vector.load %arg2[%c1, %c0_10, %c0_11] : memref<5x128x128xf32, #tpu.memory_space<vmem>>, vector<1x128x128xf32>
    %17 = vector.shape_cast %16 : vector<1x128x128xf32> to vector<128x128xf32>
    %cst_12 = arith.constant dense<0.000000e+00> : vector<8x128xf32>
    %18 = tpu.matmul %15, %17, %cst_12 {dimension_numbers = #tpu.dot_dimension_numbers<[1], [0], [0], [1], [0, 0, 1, 1], [], []>} : vector<8x128xf32>, vector<128x128xf32>, vector<8x128xf32> -> vector<8x128xf32>
    %c1_13 = arith.constant 1 : index
    %c0_14 = arith.constant 0 : index
    %c0_15 = arith.constant 0 : index
    %19 = vector.load %arg3[%c1_13, %c0_14, %c0_15] : memref<5x1x128xf32, #tpu.memory_space<vmem>>, vector<1x1x128xf32>
    %20 = vector.shape_cast %19 : vector<1x1x128xf32> to vector<1x128xf32>
    %21 = vector.broadcast %20 : vector<1x128xf32> to vector<8x128xf32>
    %22 = arith.addf %18, %21 : vector<8x128xf32>
    %cst_16 = arith.constant 5.000000e-01 : f32
    %23 = vector.broadcast %cst_16 : f32 to vector<8x128xf32>
    %24 = arith.mulf %22, %23 : vector<8x128xf32>
    %cst_17 = arith.constant 0.707106769 : f32
    %25 = vector.broadcast %cst_17 : f32 to vector<8x128xf32>
    %26 = arith.mulf %22, %25 : vector<8x128xf32>
    %27 = math.erf %26 : vector<8x128xf32>
    %cst_18 = arith.constant 1.000000e+00 : f32
    %28 = vector.broadcast %cst_18 : f32 to vector<8x128xf32>
    %29 = arith.addf %28, %27 : vector<8x128xf32>
    %30 = arith.mulf %24, %29 : vector<8x128xf32>
    %c2 = arith.constant 2 : index
    %c0_19 = arith.constant 0 : index
    %c0_20 = arith.constant 0 : index
    %31 = vector.load %arg2[%c2, %c0_19, %c0_20] : memref<5x128x128xf32, #tpu.memory_space<vmem>>, vector<1x128x128xf32>
    %32 = vector.shape_cast %31 : vector<1x128x128xf32> to vector<128x128xf32>
    %cst_21 = arith.constant dense<0.000000e+00> : vector<8x128xf32>
    %33 = tpu.matmul %30, %32, %cst_21 {dimension_numbers = #tpu.dot_dimension_numbers<[1], [0], [0], [1], [0, 0, 1, 1], [], []>} : vector<8x128xf32>, vector<128x128xf32>, vector<8x128xf32> -> vector<8x128xf32>
    %c2_22 = arith.constant 2 : index
    %c0_23 = arith.constant 0 : index
    %c0_24 = arith.constant 0 : index
    %34 = vector.load %arg3[%c2_22, %c0_23, %c0_24] : memref<5x1x128xf32, #tpu.memory_space<vmem>>, vector<1x1x128xf32>
    %35 = vector.shape_cast %34 : vector<1x1x128xf32> to vector<1x128xf32>
    %36 = vector.broadcast %35 : vector<1x128xf32> to vector<8x128xf32>
    %37 = arith.addf %33, %36 : vector<8x128xf32>
    %cst_25 = arith.constant 5.000000e-01 : f32
    %38 = vector.broadcast %cst_25 : f32 to vector<8x128xf32>
    %39 = arith.mulf %37, %38 : vector<8x128xf32>
    %cst_26 = arith.constant 0.707106769 : f32
    %40 = vector.broadcast %cst_26 : f32 to vector<8x128xf32>
    %41 = arith.mulf %37, %40 : vector<8x128xf32>
    %42 = math.erf %41 : vector<8x128xf32>
    %cst_27 = arith.constant 1.000000e+00 : f32
    %43 = vector.broadcast %cst_27 : f32 to vector<8x128xf32>
    %44 = arith.addf %43, %42 : vector<8x128xf32>
    %45 = arith.mulf %39, %44 : vector<8x128xf32>
    %c3 = arith.constant 3 : index
    %c0_28 = arith.constant 0 : index
    %c0_29 = arith.constant 0 : index
    %46 = vector.load %arg2[%c3, %c0_28, %c0_29] : memref<5x128x128xf32, #tpu.memory_space<vmem>>, vector<1x128x128xf32>
    %47 = vector.shape_cast %46 : vector<1x128x128xf32> to vector<128x128xf32>
    %cst_30 = arith.constant dense<0.000000e+00> : vector<8x128xf32>
    %48 = tpu.matmul %45, %47, %cst_30 {dimension_numbers = #tpu.dot_dimension_numbers<[1], [0], [0], [1], [0, 0, 1, 1], [], []>} : vector<8x128xf32>, vector<128x128xf32>, vector<8x128xf32> -> vector<8x128xf32>
    %c3_31 = arith.constant 3 : index
    %c0_32 = arith.constant 0 : index
    %c0_33 = arith.constant 0 : index
    %49 = vector.load %arg3[%c3_31, %c0_32, %c0_33] : memref<5x1x128xf32, #tpu.memory_space<vmem>>, vector<1x1x128xf32>
    %50 = vector.shape_cast %49 : vector<1x1x128xf32> to vector<1x128xf32>
    %51 = vector.broadcast %50 : vector<1x128xf32> to vector<8x128xf32>
    %52 = arith.addf %48, %51 : vector<8x128xf32>
    %cst_34 = arith.constant 5.000000e-01 : f32
    %53 = vector.broadcast %cst_34 : f32 to vector<8x128xf32>
    %54 = arith.mulf %52, %53 : vector<8x128xf32>
    %cst_35 = arith.constant 0.707106769 : f32
    %55 = vector.broadcast %cst_35 : f32 to vector<8x128xf32>
    %56 = arith.mulf %52, %55 : vector<8x128xf32>
    %57 = math.erf %56 : vector<8x128xf32>
    %cst_36 = arith.constant 1.000000e+00 : f32
    %58 = vector.broadcast %cst_36 : f32 to vector<8x128xf32>
    %59 = arith.addf %58, %57 : vector<8x128xf32>
    %60 = arith.mulf %54, %59 : vector<8x128xf32>
    %c4 = arith.constant 4 : index
    %c0_37 = arith.constant 0 : index
    %c0_38 = arith.constant 0 : index
    %61 = vector.load %arg2[%c4, %c0_37, %c0_38] : memref<5x128x128xf32, #tpu.memory_space<vmem>>, vector<1x128x128xf32>
    %62 = vector.shape_cast %61 : vector<1x128x128xf32> to vector<128x128xf32>
    %cst_39 = arith.constant dense<0.000000e+00> : vector<8x128xf32>
    %63 = tpu.matmul %60, %62, %cst_39 {dimension_numbers = #tpu.dot_dimension_numbers<[1], [0], [0], [1], [0, 0, 1, 1], [], []>} : vector<8x128xf32>, vector<128x128xf32>, vector<8x128xf32> -> vector<8x128xf32>
    %c4_40 = arith.constant 4 : index
    %c0_41 = arith.constant 0 : index
    %c0_42 = arith.constant 0 : index
    %64 = vector.load %arg3[%c4_40, %c0_41, %c0_42] : memref<5x1x128xf32, #tpu.memory_space<vmem>>, vector<1x1x128xf32>
    %65 = vector.shape_cast %64 : vector<1x1x128xf32> to vector<1x128xf32>
    %66 = vector.broadcast %65 : vector<1x128xf32> to vector<8x128xf32>
    %67 = arith.addf %63, %66 : vector<8x128xf32>
    %68 = vector.extract_strided_slice %67 {offsets = [0, 0], sizes = [8, 8], strides = [1, 1]} : vector<8x128xf32> to vector<8x8xf32>
    %69 = math.tanh %68 : vector<8x8xf32>
    %c0_43 = arith.constant 0 : index
    %c0_44 = arith.constant 0 : index
    %70 = vector.load %arg4[%c0_43, %c0_44] : memref<8x8xf32, #tpu.memory_space<vmem>>, vector<8x8xf32>
    tpu.vector_store %arg4[%c0_43, %c0_44], %69 {strides = array<i32>} : memref<8x8xf32, #tpu.memory_space<vmem>>, vector<8x8xf32>,
    return
  }
  func.func @transform_0(%arg0: i32) -> (i32, i32) {
    %c0_i32 = arith.constant 0 : i32
    %c0_i32_0 = arith.constant 0 : i32
    return %arg0, %c0_i32 : i32, i32
  }
  func.func @transform_1(%arg0: i32) -> (i32, i32, i32) {
    %c0_i32 = arith.constant 0 : i32
    %c0_i32_0 = arith.constant 0 : i32
    %c0_i32_1 = arith.constant 0 : i32
    %c0_i32_2 = arith.constant 0 : i32
    return %c0_i32, %c0_i32_0, %c0_i32_1 : i32, i32, i32
  }
  func.func @transform_2(%arg0: i32) -> (i32, i32, i32) {
    %c0_i32 = arith.constant 0 : i32
    %c0_i32_0 = arith.constant 0 : i32
    %c0_i32_1 = arith.constant 0 : i32
    %c0_i32_2 = arith.constant 0 : i32
    return %c0_i32, %c0_i32_0, %c0_i32_1 : i32, i32, i32
  }
  func.func @transform_3(%arg0: i32) -> (i32, i32) {
    %c0_i32 = arith.constant 0 : i32
    %c0_i32_0 = arith.constant 0 : i32
    return %arg0, %c0_i32 : i32, i32
  }
}

</mosaic_0001>

<bundles_post_ra>
// kernel: tpu_custom_call.1
= control target key start
LH: loop header
LB: loop body
LE: loop exit
PB: predicated region body
PF: predicated region fallthrough
CT: control target
= control target key end

     0   :  { %8 = vsyncpa [#allocation3], 0  ;;  %s1090_s0 = inlined_call_operand.hbm [shape: f32[8,16], index: 0, kind: input, shape index: {}]   ;;  %s1091_s1 = inlined_call_operand.hbm [shape: f32[5,128,128], index: 1, kind: input, shape index: {}]   ;;  %s1092_s2 = inlined_call_operand.vmem [shape: f32[5,1,128], index: 2, kind: input, shape index: {}]   ;;  %s1093_s3 = inlined_call_operand.hbm [shape: f32[8,8], index: 3, kind: output, shape index: {}]  }
   0x1   :  { %9 = vsyncpa [#allocation6], 0 }
   0x2   :  { %10 = vsyncpa [#allocation4], 0  ;;  %s961_s12 = smov [#allocation2]   ;;  %s962_s14 = smov [#allocation5]  }
   0x3   :  { %s17_s13 = sshll.u32 %s961_s12, 4  ;;  %s26_s15 = sshll.u32 %s962_s14, 4  ;;  %s18_s13 = int_to_ptr.vmem [resolvable:$true] %s17_s13  ;;  %s989_s15 = int_to_ptr.vmem [resolvable:$true] %s26_s15 }
   0x4   :  { %s889_s18 = scalar_lea.hbm %s1090_s0, 128 }
   0x5   :  { %p890_p0 = scmp.ne.s32.totalorder %s1090_s0, %s889_s18  ;;  %p893_p1 = scmp.lt.u32.totalorder %s889_s18, %s1090_s0 }
   0x7   :  { %p895_p2 = pnand %p893_p1, %p890_p0 }
   0x9   :  { %898 = shalt.err (!%p895_p2)
}
   0xa   :  { %s899_s23 = scalar_lea.vmem %s18_s13, 128  ;;  %p904_p4 = scmp.lt.s32.totalorder %s18_s13, %s18_s13 }
   0xb   :  { %p900_p3 = scmp.ne.s32.totalorder %s18_s13, %s899_s23  ;;  %p905_p5 = scmp.lt.s32.totalorder %s899_s23, %s899_s23 }
   0xd   :  { %p906_p6 = por %p905_p5, %p904_p4 }
   0xf   :  { %p907_p7 = pnand %p906_p6, %p900_p3 }
  0x11   :  { %910 = shalt.err (!%p907_p7)
}
  0x12   :  { %20 = dma.hbm_to_vmem [thread:$0]  %s1090_s0, 128, %s18_s13, [#allocation3]  }
  0x13   :  { %s911_s28 = scalar_lea.hbm %s1091_s1, 10240 }
  0x14   :  { %p912_p8 = scmp.ne.s32.totalorder %s1091_s1, %s911_s28  ;;  %p915_p9 = scmp.lt.u32.totalorder %s911_s28, %s1091_s1 }
  0x16   :  { %p917_p10 = pnand %p915_p9, %p912_p8 }
  0x18   :  { %920 = shalt.err (!%p917_p10)
}
  0x19   :  { %s921_s6 = scalar_lea.vmem %s989_s15, 10240  ;;  %p926_p12 = scmp.lt.s32.totalorder %s989_s15, %s989_s15 }
  0x1a   :  { %p922_p11 = scmp.ne.s32.totalorder %s989_s15, %s921_s6  ;;  %p927_p13 = scmp.lt.s32.totalorder %s921_s6, %s921_s6 }
  0x1c   :  { %p928_p0 = por %p927_p13, %p926_p12 }
  0x1e   :  { %p929_p1 = pnand %p928_p0, %p922_p11 }
  0x20   :  { %932 = shalt.err (!%p929_p1)
}
  0x21   :  { %s963_s0 = smov 128   ;;  %s964_s7 = smov 8  }
  0x22   :  { %32 = dma.hbm_to_vmem [thread:$0]  %s1091_s1, 10240, %s989_s15, [#allocation6], %s963_s0, %s963_s0, %s964_s7  }
  0x23   :  { %955 = dma.done.wait [#allocation3], 128  }
  0x24   :  { %956 = vsyncadd [#allocation3], 4294967168 }
  0x25   :  { %957 = dma.done.wait [#allocation6], 10240  }
  0x26   :  { %958 = vsyncadd [#allocation6], 4294957056  ;;  %v965_v0 = vmov 0.0|0.0   ;;  %vm966_vm0 = vmmov 0   ;;  %v967_v1 = vmov 0.0   ;;  %v42_v2 = vld [vmem:[#allocation5] sm:$0xff] }
  0x27   :  { %772 = vmatprep.subr.bf16.mxu0 %v965_v0  ;;  %629 = vmatprep.mubr.msk.f32.mxu0 %vm966_vm0, %v967_v1  ;;  %v43_v3 = vld [vmem:[#allocation5 + $0x8] sm:$0xff]  ;;  %v131_v5 = vld [vmem:[#allocation5 + $0x80] sm:$0xff]  ;;  %v133_v7 = vld [vmem:[#allocation5 + $0x90] sm:$0xff]  ;;  %vm51_vm1 = vcmask 130048   ;;  %s968_s19 = smov [#allocation7]   ;;  %vm526_vm2 = vcmask 64512  }
  0x28   :  { %775 = vmatprep.subr.bf16.mxu1 %v965_v0  ;;  %664 = vmatprep.mubr.msk.f32.mxu1 %vm966_vm0, %v967_v1  ;;  %v773_v4 = vpack.c.bf16 %v43_v3, %v42_v2  ;;  %v132_v6 = vld [vmem:[#allocation5 + $0x88] sm:$0xff]  ;;  %v134_v9 = vld [vmem:[#allocation5 + $0x98] sm:$0xff]  ;;  %v135_v12 = vld [vmem:[#allocation5 + $0xa0] sm:$0xff]  ;;  %s534_s20 = sshll.u32 %s968_s19, 4  ;;  %s535_s20 = int_to_ptr.vmem [resolvable:$true] %s534_s20 }
  0x29   :  { %v776_v8 = vpack.c.bf16 %v132_v6, %v131_v5  ;;  %v41_v10 = vld [vmem:[#allocation2] sm:$0xff]  ;;  %v779_v11 = vpack.c.bf16 %v134_v9, %v133_v7  ;;  %v136_v13 = vld [vmem:[#allocation5 + $0xa8] sm:$0xff]  ;;  %v137_v15 = vld [vmem:[#allocation5 + $0xb0] sm:$0xff]  ;;  %s933_s21 = scalar_lea.vmem %s535_s20, 128  ;;  %p938_p3 = scmp.lt.s32.totalorder %s535_s20, %s535_s20 }
  0x2a   :  { %774 = vmatpush3.bf16.msra.mxu0 %v773_v4  ;;  %v782_v14 = vpack.c.bf16 %v136_v13, %v135_v12  ;;  %v138_v16 = vld [vmem:[#allocation5 + $0xb8] sm:$0xff]  ;;  %v139_v18 = vld [vmem:[#allocation5 + $0xc0] sm:$0xff]  ;;  %v140_v19 = vld [vmem:[#allocation5 + $0xc8] sm:$0xff]  ;;  %p934_p2 = scmp.ne.s32.totalorder %s535_s20, %s933_s21  ;;  %p939_p4 = scmp.lt.s32.totalorder %s933_s21, %s933_s21 }
  0x2b   :  { %777 = vmatpush3.bf16.msra.mxu1 %v776_v8  ;;  %799 = vmatprep.subr.bf16.mxu0 %v965_v0  ;;  %v785_v17 = vpack.c.bf16 %v138_v16, %v137_v15  ;;  %v788_v20 = vpack.c.bf16 %v140_v19, %v139_v18  ;;  %v141_v21 = vld [vmem:[#allocation5 + $0xd0] sm:$0xff]  ;;  %v142_v22 = vld [vmem:[#allocation5 + $0xd8] sm:$0xff]  ;;  %v143_v24 = vld [vmem:[#allocation5 + $0xe0] sm:$0xff] }
  0x2c   :  { %778 = vmatprep.subr.bf16.mxu1 %v965_v0  ;;  %v791_v23 = vpack.c.bf16 %v142_v22, %v141_v21  ;;  %v144_v25 = vld [vmem:[#allocation5 + $0xe8] sm:$0xff]  ;;  %v145_v27 = vld [vmem:[#allocation5 + $0xf0] sm:$0xff]  ;;  %v146_v28 = vld [vmem:[#allocation5 + $0xf8] sm:$0xff]  ;;  %p940_p5 = por %p939_p4, %p938_p3 }
  0x2d   :  { %630 = vmatmul.mubr.msk.f32.vlgmr.msra.gmra.mrb[0].mxu0 %vm51_vm1, %v41_v10  ;;  %v794_v26 = vpack.c.bf16 %v144_v25, %v143_v24  ;;  %v797_v29 = vpack.c.bf16 %v146_v28, %v145_v27  ;;  %v231_v30 = vld [vmem:[#allocation5 + $0x100] sm:$0xff]  ;;  %v232_v31 = vld [vmem:[#allocation5 + $0x108] sm:$0xff]  ;;  %v233_v32 = vld [vmem:[#allocation5 + $0x110] sm:$0xff] }
  0x2e   :  { %699 = vmatprep.mubr.msk.f32.mxu0 %vm966_vm0, %v967_v1  ;;  %v800_v33 = vpack.c.bf16 %v232_v31, %v231_v30  ;;  %v234_v34 = vld [vmem:[#allocation5 + $0x118] sm:$0xff]  ;;  %v235_v36 = vld [vmem:[#allocation5 + $0x120] sm:$0xff]  ;;  %v236_v37 = vld [vmem:[#allocation5 + $0x128] sm:$0xff]  ;;  %p941_p6 = pnand %p940_p5, %p934_p2 }
  0x2f   :  { %780 = vmatpush3.bf16.msra.mxu1 %v779_v11  ;;  %v803_v35 = vpack.c.bf16 %v234_v34, %v233_v32  ;;  %v806_v38 = vpack.c.bf16 %v236_v37, %v235_v36  ;;  %v544_v39 = vld [vmem:[%s1092_s2] ss:$0 sm:$0xff]  ;;  %v237_v48 = vld [vmem:[#allocation5 + $0x130] sm:$0xff]  ;;  %v239_v51 = vld [vmem:[#allocation5 + $0x140] sm:$0xff] }
  0x30   :  { %781 = vmatprep.subr.bf16.mxu1 %v965_v0  ;;  %801 = vmatpush3.bf16.msra.mxu0 %v800_v33  ;;  %v238_v49 = vld [vmem:[#allocation5 + $0x138] sm:$0xff]  ;;  %v240_v52 = vld [vmem:[#allocation5 + $0x148] sm:$0xff]  ;;  %v241_v54 = vld [vmem:[#allocation5 + $0x150] sm:$0xff] }
  0x31   :  { %802 = vmatprep.subr.bf16.mxu0 %v965_v0  ;;  %v809_v50 = vpack.c.bf16 %v238_v49, %v237_v48  ;;  %v812_v53 = vpack.c.bf16 %v240_v52, %v239_v51  ;;  %v242_v55 = vld [vmem:[#allocation5 + $0x158] sm:$0xff]  ;;  %v243_v57 = vld [vmem:[#allocation5 + $0x160] sm:$0xff]  ;;  %v244_v58 = vld [vmem:[#allocation5 + $0x168] sm:$0xff] }
  0x32   :  { %v815_v56 = vpack.c.bf16 %v242_v55, %v241_v54  ;;  %v818_v59 = vpack.c.bf16 %v244_v58, %v243_v57  ;;  %v245_v60 = vld [vmem:[#allocation5 + $0x170] sm:$0xff]  ;;  %v246_v61 = vld [vmem:[#allocation5 + $0x178] sm:$0xff]  ;;  %v331_v63 = vld [vmem:[#allocation5 + $0x180] sm:$0xff] }
  0x33   :  { %783 = vmatpush3.bf16.msra.mxu1 %v782_v14  ;;  %v821_v62 = vpack.c.bf16 %v246_v61, %v245_v60  ;;  %v332_v2 = vld [vmem:[#allocation5 + $0x188] sm:$0xff]  ;;  %v333_v3 = vld [vmem:[#allocation5 + $0x190] sm:$0xff]  ;;  %v334_v5 = vld [vmem:[#allocation5 + $0x198] sm:$0xff] }
  0x34   :  { %784 = vmatprep.subr.bf16.mxu1 %v965_v0  ;;  %804 = vmatpush3.bf16.msra.mxu0 %v803_v35  ;;  %v824_v4 = vpack.c.bf16 %v332_v2, %v331_v63  ;;  %v827_v6 = vpack.c.bf16 %v334_v5, %v333_v3  ;;  %v335_v7 = vld [vmem:[#allocation5 + $0x1a0] sm:$0xff]  ;;  %v336_v8 = vld [vmem:[#allocation5 + $0x1a8] sm:$0xff]  ;;  %v547_v10 = vld [vmem:[%s1092_s2 + $0x1] ss:$0 sm:$0xff] }
  0x35   :  { %805 = vmatprep.subr.bf16.mxu0 %v965_v0  ;;  %v830_v9 = vpack.c.bf16 %v336_v8, %v335_v7  ;;  %v337_v19 = vld [vmem:[#allocation5 + $0x1b0] sm:$0xff]  ;;  %v339_v22 = vld [vmem:[#allocation5 + $0x1c0] sm:$0xff]  ;;  %v346_v31 = vld [vmem:[#allocation5 + $0x1f8] sm:$0xff] }
  0x36   :  { %v341_v25 = vld [vmem:[#allocation5 + $0x1d0] sm:$0xff]  ;;  %v343_v28 = vld [vmem:[#allocation5 + $0x1e0] sm:$0xff]  ;;  %v432_v34 = vld [vmem:[#allocation5 + $0x208] sm:$0xff] }
  0x37   :  { %786 = vmatpush3.bf16.msra.mxu1 %v785_v17  ;;  %v345_v30 = vld [vmem:[#allocation5 + $0x1f0] sm:$0xff]  ;;  %v431_v33 = vld [vmem:[#allocation5 + $0x200] sm:$0xff]  ;;  %v434_v37 = vld [vmem:[#allocation5 + $0x218] sm:$0xff] }
  0x38   :  { %787 = vmatprep.subr.bf16.mxu1 %v965_v0  ;;  %807 = vmatpush3.bf16.msra.mxu0 %v806_v38  ;;  %v845_v32 = vpack.c.bf16 %v346_v31, %v345_v30  ;;  %v433_v35 = vld [vmem:[#allocation5 + $0x210] sm:$0xff]  ;;  %v848_v36 = vpack.c.bf16 %v432_v34, %v431_v33  ;;  %v438_v52 = vld [vmem:[#allocation5 + $0x238] sm:$0xff]  ;;  %v439_v54 = vld [vmem:[#allocation5 + $0x240] sm:$0xff] }
  0x39   :  { %808 = vmatprep.subr.bf16.mxu0 %v965_v0  ;;  %v851_v38 = vpack.c.bf16 %v434_v37, %v433_v35  ;;  %v437_v51 = vld [vmem:[#allocation5 + $0x230] sm:$0xff]  ;;  %v440_v55 = vld [vmem:[#allocation5 + $0x248] sm:$0xff]  ;;  %v442_v58 = vld [vmem:[#allocation5 + $0x258] sm:$0xff] }
  0x3a   :  { %v441_v57 = vld [vmem:[#allocation5 + $0x250] sm:$0xff]  ;;  %v443_v60 = vld [vmem:[#allocation5 + $0x260] sm:$0xff]  ;;  %v444_v61 = vld [vmem:[#allocation5 + $0x268] sm:$0xff] }
  0x3b   :  { %789 = vmatpush3.bf16.msra.mxu1 %v788_v20  ;;  %v338_v20 = vld [vmem:[#allocation5 + $0x1b8] sm:$0xff]  ;;  %v445_v63 = vld [vmem:[#allocation5 + $0x270] sm:$0xff] }
  0x3c   :  { %790 = vmatprep.subr.bf16.mxu1 %v965_v0  ;;  %810 = vmatpush3.bf16.msra.mxu0 %v809_v50  ;;  %v833_v21 = vpack.c.bf16 %v338_v20, %v337_v19  ;;  %v446_v2 = vld [vmem:[#allocation5 + $0x278] sm:$0xff] }
  0x3d   :  { %811 = vmatprep.subr.bf16.mxu0 %v965_v0  ;;  %v869_v3 = vpack.c.bf16 %v446_v2, %v445_v63 }
  0x3f   :  { %792 = vmatpush3.bf16.msra.mxu1 %v791_v23  ;;  %v340_v23 = vld [vmem:[#allocation5 + $0x1c8] sm:$0xff] }
  0x40   :  { %793 = vmatprep.subr.bf16.mxu1 %v965_v0  ;;  %813 = vmatpush3.bf16.msra.mxu0 %v812_v53  ;;  %v836_v24 = vpack.c.bf16 %v340_v23, %v339_v22  ;;  %v857_v53 = vpack.c.bf16 %v438_v52, %v437_v51 }
  0x41   :  { %814 = vmatprep.subr.bf16.mxu0 %v965_v0 }
  0x43   :  { %795 = vmatpush3.bf16.msra.mxu1 %v794_v26  ;;  %v342_v26 = vld [vmem:[#allocation5 + $0x1d8] sm:$0xff] }
  0x44   :  { %796 = vmatprep.subr.bf16.mxu1 %v965_v0  ;;  %816 = vmatpush3.bf16.msra.mxu0 %v815_v56  ;;  %v839_v27 = vpack.c.bf16 %v342_v26, %v341_v25  ;;  %v860_v56 = vpack.c.bf16 %v440_v55, %v439_v54 }
  0x45   :  { %817 = vmatprep.subr.bf16.mxu0 %v965_v0 }
  0x47   :  { %798 = vmatpush3.bf16.msra.mxu1 %v797_v29 }
  0x48   :  { %823 = vmatprep.subr.bf16.mxu1 %v965_v0  ;;  %819 = vmatpush3.bf16.msra.mxu0 %v818_v59  ;;  %v863_v59 = vpack.c.bf16 %v442_v58, %v441_v57 }
  0x49   :  { %820 = vmatprep.subr.bf16.mxu0 %v965_v0 }
  0x4c   :  { %822 = vmatpush3.bf16.msra.mxu0 %v821_v62  ;;  %v866_v62 = vpack.c.bf16 %v444_v61, %v443_v60 }
  0x4d   :  { %847 = vmatprep.subr.bf16.mxu0 %v965_v0 }
 0x100   :  { %v121_v40 = vpop.f32.mrb[0].mxu0 }
 0x101   :  { %v122_v41 = vadd.f32 %v544_v39, %v121_v40  ;;  %v631_v42 = vpop.f32.mrb[1].mxu0  ;;  %v435_v39 = vld [vmem:[#allocation5 + $0x220] sm:$0xff]  ;;  %v436_v40 = vld [vmem:[#allocation5 + $0x228] sm:$0xff] }
 0x102   :  { %v549_v42 = vld [vmem:[%s1092_s2 + $0x2] ss:$0 sm:$0xff] }
 0x103   :  { %v126_v43 = vmul.f32 0.70710677, %v122_v41  ;;  %v125_v45 = vmul.f32 0.5, %v122_v41  ;;  %v854_v41 = vpack.c.bf16 %v436_v40, %v435_v39 }
 0x105   :  { %879 = verf.f32 %v126_v43 }
 0x10f   :  { %v880_v44 = vpop.eup %879 }
 0x110   :  { %v128_v46 = vadd.f32 1.0, %v880_v44 }
 0x112   :  { %v129_v47 = vmul.f32 %v128_v46, %v125_v45 }
 0x114   :  { %665 = vmatmul.mubr.f32.vlgmr.msra.gmra.mrb[0].mxu1 %v129_v47 }
 0x115   :  { %734 = vmatprep.mubr.msk.f32.mxu1 %vm966_vm0, %v967_v1  ;;  %825 = vmatpush3.bf16.msra.mxu1 %v824_v4  ;;  %v551_v4 = vld [vmem:[%s1092_s2 + $0x3] ss:$0 sm:$0xff] }
 0x116   :  { %826 = vmatprep.subr.bf16.mxu1 %v965_v0 }
 0x119   :  { %828 = vmatpush3.bf16.msra.mxu1 %v827_v6 }
 0x11a   :  { %829 = vmatprep.subr.bf16.mxu1 %v965_v0 }
 0x11d   :  { %831 = vmatpush3.bf16.msra.mxu1 %v830_v9 }
 0x11e   :  { %832 = vmatprep.subr.bf16.mxu1 %v965_v0 }
 0x121   :  { %834 = vmatpush3.bf16.msra.mxu1 %v833_v21 }
 0x122   :  { %835 = vmatprep.subr.bf16.mxu1 %v965_v0 }
 0x125   :  { %837 = vmatpush3.bf16.msra.mxu1 %v836_v24 }
 0x126   :  { %838 = vmatprep.subr.bf16.mxu1 %v965_v0 }
 0x129   :  { %840 = vmatpush3.bf16.msra.mxu1 %v839_v27 }
 0x12a   :  { %841 = vmatprep.subr.bf16.mxu1 %v965_v0 }
 0x1e7   :  { %v221_v11 = vpop.f32.mrb[0].mxu1 }
 0x1e8   :  { %v222_v12 = vadd.f32 %v547_v10, %v221_v11  ;;  %v666_v13 = vpop.f32.mrb[1].mxu1 }
 0x1ea   :  { %v226_v14 = vmul.f32 0.70710677, %v222_v12  ;;  %v225_v16 = vmul.f32 0.5, %v222_v12 }
 0x1ec   :  { %881 = verf.f32 %v226_v14 }
 0x1f6   :  { %v882_v15 = vpop.eup %881 }
 0x1f7   :  { %v228_v17 = vadd.f32 1.0, %v882_v15 }
 0x1f9   :  { %v229_v18 = vmul.f32 %v228_v17, %v225_v16 }
 0x1fb   :  { %700 = vmatmul.mubr.f32.vlgmr.msra.gmra.mrb[2].mxu0 %v229_v18 }
 0x1fc   :  { %769 = vmatprep.mubr.msk.f32.mxu0 %vm966_vm0, %v967_v1  ;;  %v344_v1 = vld [vmem:[#allocation5 + $0x1e8] sm:$0xff]  ;;  %849 = vmatpush3.bf16.msra.mxu0 %v848_v36 }
 0x1fd   :  { %v842_v29 = vpack.c.bf16 %v344_v1, %v343_v28  ;;  %850 = vmatprep.subr.bf16.mxu0 %v965_v0 }
 0x1ff   :  { %843 = vmatpush3.bf16.msra.mxu1 %v842_v29 }
 0x200   :  { %844 = vmatprep.subr.bf16.mxu1 %v965_v0  ;;  %852 = vmatpush3.bf16.msra.mxu0 %v851_v38 }
 0x201   :  { %853 = vmatprep.subr.bf16.mxu0 %v965_v0 }
 0x203   :  { %846 = vmatpush3.bf16.msra.mxu1 %v845_v32 }
 0x204   :  { %855 = vmatpush3.bf16.msra.mxu0 %v854_v41 }
 0x205   :  { %856 = vmatprep.subr.bf16.mxu0 %v965_v0 }
 0x208   :  { %858 = vmatpush3.bf16.msra.mxu0 %v857_v53 }
 0x209   :  { %859 = vmatprep.subr.bf16.mxu0 %v965_v0 }
 0x20c   :  { %861 = vmatpush3.bf16.msra.mxu0 %v860_v56 }
 0x20d   :  { %862 = vmatprep.subr.bf16.mxu0 %v965_v0 }
 0x210   :  { %864 = vmatpush3.bf16.msra.mxu0 %v863_v59 }
 0x211   :  { %865 = vmatprep.subr.bf16.mxu0 %v965_v0 }
 0x214   :  { %867 = vmatpush3.bf16.msra.mxu0 %v866_v62 }
 0x215   :  { %868 = vmatprep.subr.bf16.mxu0 %v965_v0  ;;  %v553_v0 = vld [vmem:[%s1092_s2 + $0x4] ss:$0 sm:$0xff] }
 0x218   :  { %870 = vmatpush3.bf16.msra.mxu0 %v869_v3 }
 0x2ce   :  { %v321_v43 = vpop.f32.mrb[2].mxu0 }
 0x2cf   :  { %v322_v44 = vadd.f32 %v549_v42, %v321_v43  ;;  %v701_v45 = vpop.f32.mrb[3].mxu0 }
 0x2d1   :  { %v326_v46 = vmul.f32 0.70710677, %v322_v44  ;;  %v325_v48 = vmul.f32 0.5, %v322_v44 }
 0x2d3   :  { %883 = verf.f32 %v326_v46 }
 0x2dd   :  { %v884_v47 = vpop.eup %883 }
 0x2de   :  { %v328_v49 = vadd.f32 1.0, %v884_v47 }
 0x2e0   :  { %v329_v50 = vmul.f32 %v328_v49, %v325_v48 }
 0x2e2   :  { %735 = vmatmul.mubr.f32.vlgmr.msra.gmra.mrb[2].mxu1 %v329_v50 }
 0x3b5   :  { %v421_v5 = vpop.f32.mrb[2].mxu1 }
 0x3b6   :  { %v422_v6 = vadd.f32 %v551_v4, %v421_v5  ;;  %v736_v7 = vpop.f32.mrb[3].mxu1 }
 0x3b8   :  { %v426_v8 = vmul.f32 0.70710677, %v422_v6  ;;  %v425_v10 = vmul.f32 0.5, %v422_v6 }
 0x3ba   :  { %885 = verf.f32 %v426_v8 }
 0x3c4   :  { %v886_v9 = vpop.eup %885 }
 0x3c5   :  { %v428_v11 = vadd.f32 1.0, %v886_v9 }
 0x3c7   :  { %v429_v12 = vmul.f32 %v428_v11, %v425_v10 }
 0x3c9   :  { %770 = vmatmul.mubr.f32.vlgmr.msra.gmra.mrb[4].mxu0 %v429_v12 }
 0x49c   :  { %v521_v13 = vpop.f32.mrb[4].mxu0 }
 0x49d   :  { %v522_v14 = vadd.f32 %v553_v0, %v521_v13  ;;  %v771_v15 = vpop.f32.mrb[5].mxu0 }
 0x49f   :  { %887 = vtanh.f32 %v522_v14 }
 0x4a9   :  { %v888_v16 = vpop.eup %887 }
 0x4aa   :  { %527 = vst.msk [vmem:[#allocation7] sm:$0xff] %vm526_vm2, %v888_v16 }
 0x4ab   :  { %944 = shalt.err (!%p941_p6)
}
 0x4ac   :  { %s945_s2 = scalar_lea.hbm %s1093_s3, 128 }
 0x4ad   :  { %p946_p7 = scmp.ne.s32.totalorder %s1093_s3, %s945_s2  ;;  %p949_p8 = scmp.lt.u32.totalorder %s945_s2, %s1093_s3 }
 0x4af   :  { %p951_p9 = pnand %p949_p8, %p946_p7 }
 0x4b1   :  { %954 = shalt.err (!%p951_p9)
}
 0x4b2   :  { %537 = dma.vmem_to_hbm [thread:$0]  %s535_s20, 128, %s1093_s3, [#allocation4]  }
 0x4b3   :  { %959 = dma.done.wait [#allocation4], 128  }
 0x4b4   :  { %960 = vsyncadd [#allocation4], 4294967168 }
 0x4b5   :  { %541 = vsyncpa [#allocation3], 1 }
 0x4b6   :  { %542 = vsyncpa [#allocation6], 1 }
 0x4b7   :  { %543 = vsyncpa [#allocation4], 1 }

</bundles_post_ra>
